<compile_context>
chip_gen: v7x
topology: tpu7x:2x2x1
jax: 0.10.0
libtpu: 0.0.40
codegen_flags: <defaults>
</compile_context>

<pallas_src>
import jax
import jax.numpy as jnp
from jax.experimental import pallas as pl
from jax.experimental.pallas import tpu as pltpu

H1, H2 = 120, 84                  # real hidden widths (PyTorch LeNetExpert)
LANE = 128


def _round_up(n, m):
    return -(-n // m) * m


def lenet_expert_kernel(x_ref, w1_ref, b1_ref, w2_ref, b2_ref, w3_ref, b3_ref, o_ref):
    # x arrives f32; cast to bf16 in-kernel (VPU, free under the DMA).
    x = x_ref[...].astype(jnp.bfloat16)
    # fc1 (bf16 MXU, f32 acc) + bias + ReLU
    h1 = jnp.dot(x, w1_ref[...], preferred_element_type=jnp.float32)
    h1 = jnp.maximum(h1 + b1_ref[...], 0.0).astype(jnp.bfloat16)
    # dropout1: identity at inference
    # fc2 + bias + ReLU
    h2 = jnp.dot(h1, w2_ref[...], preferred_element_type=jnp.float32)
    h2 = jnp.maximum(h2 + b2_ref[...], 0.0).astype(jnp.bfloat16)
    # dropout2: identity at inference
    # fc3: f32 bias add, bf16 writeback (halves output HBM bytes)
    o = jnp.dot(h2, w3_ref[...], preferred_element_type=jnp.float32) + b3_ref[...]
    o_ref[...] = o.astype(o_ref.dtype)


def lenet_expert_forward(x, params, *, block_b=512):
    """x: [B, feature_dim] float32. params: padded bf16 weights / f32 biases."""
    B, feat = x.shape
    num_classes = params["num_classes"]
    h1_pad = params["w1"].shape[1]
    h2_pad = params["w2"].shape[1]
    out_pad = params["w3"].shape[1]

    # Keep >= 2 grid steps when the batch allows (v7x: two TensorCores split the
    # "parallel" batch axis) and keep the block a multiple of 8 sublanes.
    half_b = _round_up(-(-B // 2), 8)
    block_b = max(8, min(block_b, half_b))
    nb = pl.cdiv(B, block_b)
    b_pad = nb * block_b
    if b_pad != B:
        x = jnp.pad(x, ((0, b_pad - B), (0, 0)))

    # VMEM footprint: double-buffered x (f32) + out (bf16) blocks, single-buffered
    # weights/biases, plus f32 intermediates; generous headroom, capped at 64 MiB
    # (v7x physical VMEM per TC).
    weight_bytes = (feat * h1_pad + h1_pad * h2_pad + h2_pad * out_pad) * 2 \
                   + (h1_pad + h2_pad + out_pad) * 4
    stream_bytes = 2 * block_b * feat * 4 + 2 * block_b * out_pad * 2
    scratch_bytes = block_b * (h1_pad + h2_pad + out_pad) * 4
    vmem_limit = int(min(
        64 << 20,
        max(16 << 20, 2 * (weight_bytes + stream_bytes + scratch_bytes) + (2 << 20)),
    ))

    flops = 2 * b_pad * (feat * h1_pad + h1_pad * h2_pad + h2_pad * out_pad)
    bytes_accessed = (b_pad * feat * 4            # x read (f32)
                      + b_pad * out_pad * 2       # logits write (bf16)
                      + weight_bytes)             # resident weights/biases

    resident = dict(pipeline_mode=pl.Buffered(1))  # constant index_map -> single buffer

    out = pl.pallas_call(
        lenet_expert_kernel,
        out_shape=jax.ShapeDtypeStruct((b_pad, out_pad), jnp.bfloat16),
        grid=(nb,),
        in_specs=[
            # streamed activations: one batch block per grid step (double-buffered)
            pl.BlockSpec((block_b, feat), lambda i: (i, 0)),
            # weights / biases: constant index_map -> resident in VMEM, single buffer
            pl.BlockSpec((feat, h1_pad), lambda i: (0, 0), **resident),
            pl.BlockSpec((1, h1_pad), lambda i: (0, 0), **resident),
            pl.BlockSpec((h1_pad, h2_pad), lambda i: (0, 0), **resident),
            pl.BlockSpec((1, h2_pad), lambda i: (0, 0), **resident),
            pl.BlockSpec((h2_pad, out_pad), lambda i: (0, 0), **resident),
            pl.BlockSpec((1, out_pad), lambda i: (0, 0), **resident),
        ],
        out_specs=pl.BlockSpec((block_b, out_pad), lambda i: (i, 0)),
        compiler_params=pltpu.CompilerParams(
            dimension_semantics=("parallel",),
            vmem_limit_bytes=vmem_limit,
        ),
        cost_estimate=pl.CostEstimate(
            flops=flops, transcendentals=0, bytes_accessed=bytes_accessed),
    )(x, params["w1"], params["b1"], params["w2"], params["b2"],
      params["w3"], params["b3"])

    # Slice off batch / lane padding; return f32 logits (slice + cast fuse).
    return out[:B, :num_classes].astype(jnp.float32)


def init_params(key, feature_dim, num_classes):
    """PyTorch-style uniform init; weights stored [in, out], zero-padded to
    lane-aligned widths, bf16 for MXU operands; biases f32, zero-padded."""
    h1_pad = _round_up(H1, LANE)
    h2_pad = _round_up(H2, LANE)
    out_pad = _round_up(num_classes, LANE)
    ks = jax.random.split(key, 6)

    def lin(kw, kb, fan_in, fan_out, pad_in, pad_out):
        assert fan_in <= pad_in and fan_out <= pad_out
        bound = 1.0 / (fan_in ** 0.5)
        w = jax.random.uniform(kw, (fan_in, fan_out), jnp.float32, -bound, bound)
        b = jax.random.uniform(kb, (1, fan_out), jnp.float32, -bound, bound)
        w = jnp.pad(w, ((0, pad_in - fan_in), (0, pad_out - fan_out)))
        b = jnp.pad(b, ((0, 0), (0, pad_out - fan_out)))
        return w.astype(jnp.bfloat16), b  # bias stays f32 (added to f32 acc)

    w1, b1 = lin(ks[0], ks[1], feature_dim, H1, feature_dim, h1_pad)
    w2, b2 = lin(ks[2], ks[3], H1, H2, h1_pad, h2_pad)
    w3, b3 = lin(ks[4], ks[5], H2, num_classes, h2_pad, out_pad)
    return {"w1": w1, "b1": b1, "w2": w2, "b2": b2, "w3": w3, "b3": b3,
            "num_classes": num_classes}


def reference_forward(x, p):
    """Pure-JAX reference with identical bf16-operand / f32-accumulate /
    bf16-writeback math (zero-padded columns do not affect real lanes)."""
    xb = x.astype(jnp.bfloat16)
    h1 = jnp.maximum(
        jnp.dot(xb, p["w1"], preferred_element_type=jnp.float32) + p["b1"], 0.0)
    h2 = jnp.maximum(
        jnp.dot(h1.astype(jnp.bfloat16), p["w2"],
                preferred_element_type=jnp.float32) + p["b2"], 0.0)
    logits = jnp.dot(h2.astype(jnp.bfloat16), p["w3"],
                     preferred_element_type=jnp.float32) + p["b3"]
    logits = logits.astype(jnp.bfloat16).astype(jnp.float32)
    return logits[:, : p["num_classes"]]


if __name__ == "__main__":
    feature_dim = 32
    num_classes = 10
    batch = 256          # -> 2 batch blocks of 128 rows: exercises grid + megacore

    key = jax.random.PRNGKey(0)
    kx, kp = jax.random.split(key)
    x = jax.random.normal(kx, (batch, feature_dim), jnp.float32)
    params = init_params(kp, feature_dim, num_classes)

    out = lenet_expert_forward(x, params)
    out = jax.block_until_ready(out)

    ref = reference_forward(x, params)
    assert out.shape == (batch, num_classes)
    assert jnp.allclose(out, ref, atol=1e-2, rtol=1e-2)
    print("KERNEL_OK")
</pallas_src>

<mosaic_0001>
module attributes {stable_mosaic.version = 11 : i64} {
  func.func @lenet_expert_kernel(%arg0: i32, %arg1: memref<128x32xf32, #tpu.memory_space<vmem>>, %arg2: memref<32x128xbf16, #tpu.memory_space<vmem>>, %arg3: memref<1x128xf32, #tpu.memory_space<vmem>>, %arg4: memref<128x128xbf16, #tpu.memory_space<vmem>>, %arg5: memref<1x128xf32, #tpu.memory_space<vmem>>, %arg6: memref<128x128xbf16, #tpu.memory_space<vmem>>, %arg7: memref<1x128xf32, #tpu.memory_space<vmem>>, %arg8: memref<128x128xbf16, #tpu.memory_space<vmem>>) attributes {dimension_semantics = [#tpu.dimension_semantics<parallel>], iteration_bounds = array<i64: 2>, scalar_prefetch = 0 : i64, scratch_operands = 0 : i64, tpu.core_type = #tpu.core_type<tc>, window_params = [{transform_indices = @transform_0, window_bounds = array<i64: 128, 32>}, {pipeline_mode = #tpu.pipeline_mode<synchronous>, transform_indices = @transform_1, window_bounds = array<i64: 32, 128>}, {pipeline_mode = #tpu.pipeline_mode<synchronous>, transform_indices = @transform_2, window_bounds = array<i64: 1, 128>}, {pipeline_mode = #tpu.pipeline_mode<synchronous>, transform_indices = @transform_3, window_bounds = array<i64: 128, 128>}, {pipeline_mode = #tpu.pipeline_mode<synchronous>, transform_indices = @transform_4, window_bounds = array<i64: 1, 128>}, {pipeline_mode = #tpu.pipeline_mode<synchronous>, transform_indices = @transform_5, window_bounds = array<i64: 128, 128>}, {pipeline_mode = #tpu.pipeline_mode<synchronous>, transform_indices = @transform_6, window_bounds = array<i64: 1, 128>}, {transform_indices = @transform_7, window_bounds = array<i64: 128, 128>}]} {
    %c0 = arith.constant 0 : index
    %c0_0 = arith.constant 0 : index
    %0 = vector.load %arg1[%c0, %c0_0] : memref<128x32xf32, #tpu.memory_space<vmem>>, vector<128x32xf32>
    %1 = arith.truncf %0 : vector<128x32xf32> to vector<128x32xbf16>
    %c0_1 = arith.constant 0 : index
    %c0_2 = arith.constant 0 : index
    %2 = vector.load %arg2[%c0_1, %c0_2] : memref<32x128xbf16, #tpu.memory_space<vmem>>, vector<32x128xbf16>
    %cst = arith.constant dense<0.000000e+00> : vector<128x128xf32>
    %3 = tpu.matmul %1, %2, %cst {dimension_numbers = #tpu.dot_dimension_numbers<[1], [0], [0], [1], [0, 0, 1, 1], [], []>} : vector<128x32xbf16>, vector<32x128xbf16>, vector<128x128xf32> -> vector<128x128xf32>
    %c0_3 = arith.constant 0 : index
    %c0_4 = arith.constant 0 : index
    %4 = vector.load %arg3[%c0_3, %c0_4] : memref<1x128xf32, #tpu.memory_space<vmem>>, vector<1x128xf32>
    %5 = vector.broadcast %4 : vector<1x128xf32> to vector<128x128xf32>
    %6 = arith.addf %3, %5 : vector<128x128xf32>
    %cst_5 = arith.constant 0.000000e+00 : f32
    %7 = vector.broadcast %cst_5 : f32 to vector<128x128xf32>
    %8 = arith.maximumf %6, %7 : vector<128x128xf32>
    %9 = arith.truncf %8 : vector<128x128xf32> to vector<128x128xbf16>
    %c0_6 = arith.constant 0 : index
    %c0_7 = arith.constant 0 : index
    %10 = vector.load %arg4[%c0_6, %c0_7] : memref<128x128xbf16, #tpu.memory_space<vmem>>, vector<128x128xbf16>
    %cst_8 = arith.constant dense<0.000000e+00> : vector<128x128xf32>
    %11 = tpu.matmul %9, %10, %cst_8 {dimension_numbers = #tpu.dot_dimension_numbers<[1], [0], [0], [1], [0, 0, 1, 1], [], []>} : vector<128x128xbf16>, vector<128x128xbf16>, vector<128x128xf32> -> vector<128x128xf32>
    %c0_9 = arith.constant 0 : index
    %c0_10 = arith.constant 0 : index
    %12 = vector.load %arg5[%c0_9, %c0_10] : memref<1x128xf32, #tpu.memory_space<vmem>>, vector<1x128xf32>
    %13 = vector.broadcast %12 : vector<1x128xf32> to vector<128x128xf32>
    %14 = arith.addf %11, %13 : vector<128x128xf32>
    %cst_11 = arith.constant 0.000000e+00 : f32
    %15 = vector.broadcast %cst_11 : f32 to vector<128x128xf32>
    %16 = arith.maximumf %14, %15 : vector<128x128xf32>
    %17 = arith.truncf %16 : vector<128x128xf32> to vector<128x128xbf16>
    %c0_12 = arith.constant 0 : index
    %c0_13 = arith.constant 0 : index
    %18 = vector.load %arg6[%c0_12, %c0_13] : memref<128x128xbf16, #tpu.memory_space<vmem>>, vector<128x128xbf16>
    %cst_14 = arith.constant dense<0.000000e+00> : vector<128x128xf32>
    %19 = tpu.matmul %17, %18, %cst_14 {dimension_numbers = #tpu.dot_dimension_numbers<[1], [0], [0], [1], [0, 0, 1, 1], [], []>} : vector<128x128xbf16>, vector<128x128xbf16>, vector<128x128xf32> -> vector<128x128xf32>
    %c0_15 = arith.constant 0 : index
    %c0_16 = arith.constant 0 : index
    %20 = vector.load %arg7[%c0_15, %c0_16] : memref<1x128xf32, #tpu.memory_space<vmem>>, vector<1x128xf32>
    %21 = vector.broadcast %20 : vector<1x128xf32> to vector<128x128xf32>
    %22 = arith.addf %19, %21 : vector<128x128xf32>
    %23 = arith.truncf %22 : vector<128x128xf32> to vector<128x128xbf16>
    %c0_17 = arith.constant 0 : index
    %c0_18 = arith.constant 0 : index
    %24 = vector.load %arg8[%c0_17, %c0_18] : memref<128x128xbf16, #tpu.memory_space<vmem>>, vector<128x128xbf16>
    tpu.vector_store %arg8[%c0_17, %c0_18], %23 {strides = array<i32>} : memref<128x128xbf16, #tpu.memory_space<vmem>>, vector<128x128xbf16>,
    return
  }
  func.func @transform_0(%arg0: i32) -> (i32, i32) {
    %c0_i32 = arith.constant 0 : i32
    %c0_i32_0 = arith.constant 0 : i32
    return %arg0, %c0_i32 : i32, i32
  }
  func.func @transform_1(%arg0: i32) -> (i32, i32) {
    %c0_i32 = arith.constant 0 : i32
    %c0_i32_0 = arith.constant 0 : i32
    %c0_i32_1 = arith.constant 0 : i32
    return %c0_i32, %c0_i32_0 : i32, i32
  }
  func.func @transform_2(%arg0: i32) -> (i32, i32) {
    %c0_i32 = arith.constant 0 : i32
    %c0_i32_0 = arith.constant 0 : i32
    %c0_i32_1 = arith.constant 0 : i32
    return %c0_i32, %c0_i32_0 : i32, i32
  }
  func.func @transform_3(%arg0: i32) -> (i32, i32) {
    %c0_i32 = arith.constant 0 : i32
    %c0_i32_0 = arith.constant 0 : i32
    %c0_i32_1 = arith.constant 0 : i32
    return %c0_i32, %c0_i32_0 : i32, i32
  }
  func.func @transform_4(%arg0: i32) -> (i32, i32) {
    %c0_i32 = arith.constant 0 : i32
    %c0_i32_0 = arith.constant 0 : i32
    %c0_i32_1 = arith.constant 0 : i32
    return %c0_i32, %c0_i32_0 : i32, i32
  }
  func.func @transform_5(%arg0: i32) -> (i32, i32) {
    %c0_i32 = arith.constant 0 : i32
    %c0_i32_0 = arith.constant 0 : i32
    %c0_i32_1 = arith.constant 0 : i32
    return %c0_i32, %c0_i32_0 : i32, i32
  }
  func.func @transform_6(%arg0: i32) -> (i32, i32) {
    %c0_i32 = arith.constant 0 : i32
    %c0_i32_0 = arith.constant 0 : i32
    %c0_i32_1 = arith.constant 0 : i32
    return %c0_i32, %c0_i32_0 : i32, i32
  }
  func.func @transform_7(%arg0: i32) -> (i32, i32) {
    %c0_i32 = arith.constant 0 : i32
    %c0_i32_0 = arith.constant 0 : i32
    return %arg0, %c0_i32 : i32, i32
  }
}

</mosaic_0001>

<bundles_post_ra>
// kernel: tpu_custom_call.1
= control target key start
LH: loop header
LB: loop body
LE: loop exit
PB: predicated region body
PF: predicated region fallthrough
CT: control target
= control target key end

     0   :  { %12 = vsyncpa [#allocation3], 0  ;;  %s1609_s0 = inlined_call_operand.vmem [shape: f32[256,32], index: 0, kind: input, shape index: {}]   ;;  %s1610_s1 = inlined_call_operand.vmem [shape: bf16[32,128], index: 1, kind: input, shape index: {}]   ;;  %s1611_s2 = inlined_call_operand.vmem [shape: f32[1,128], index: 2, kind: input, shape index: {}]   ;;  %s1612_s3 = inlined_call_operand.vmem [shape: bf16[128,128], index: 3, kind: input, shape index: {}]   ;;  %s1613_s4 = inlined_call_operand.vmem [shape: f32[1,128], index: 4, kind: input, shape index: {}]   ;;  %s1614_s5 = inlined_call_operand.vmem [shape: bf16[128,128], index: 5, kind: input, shape index: {}]   ;;  %s1615_s6 = inlined_call_operand.vmem [shape: f32[1,128], index: 6, kind: input, shape index: {}]   ;;  %s1616_s7 = inlined_call_operand.hbm [shape: bf16[256,128], index: 7, kind: output, shape index: {}]  }
   0x1   :  { %14 = vsyncpa [#allocation3 + $0x1], 0  ;;  %s1403_s24 = smov 0   ;;  %s1405_s25 = smov 0  }
   0x2   :  { %s1407_s26 = smov 0   ;;  %s1409_s27 = smov 0  }
   0x3 LB: > { %s1424_s28 = sadd.s32 4294967295, %s1358_s27   ;;  %s990_s29 = sadd.s32 4294967294, %s1358_s27   ;;  %s1358_s27 = sphi %s1409_s27, %s1622_s27   ;;  %s1354_s26 = sphi %s1407_s26, %s1621_s26   ;;  %s1350_s25 = sphi %s1405_s25, %s1620_s25   ;;  %s1346_s24 = sphi %s1403_s24, %s1619_s24  }
   0x4   : > { %s1428_s30 = sadd.s32 1, %s1358_s27   ;;  %s179_s8 = sadd.s32 1, %s1354_s26 }
   0x5   : > { %s176_s9 = ssub.s32 %s1358_s27, %s1428_s30  ;;  %p189_p0 = scmp.ne.s32.totalorder %s1354_s26, %s1350_s25 }
   0x6   : > { %p177_p1 = scmp.eq.s32.totalorder %s176_s9, 0  ;;  %p190_p2 = scmp.eq.s32.totalorder %s1424_s28, 1 }
   0x7   : > { %p195_p3 = scmp.ne.s32.totalorder %s1350_s25, %s1346_s24  ;;  %p196_p4 = scmp.eq.s32.totalorder %s990_s29, 1 }
   0x8   : > { %s1439_s10 = scalar_select %p177_p1, %s1354_s26, %s179_s8  }
   0x9   : > { %p1441_p5 = por %p190_p2, %p189_p0  ;;  %p1445_p6 = por %p196_p4, %p195_p3 }
   0xa   : > { %p993_p7 = scmp.ge.s32.totalorder %s1358_s27, 1  ;;  %p241_p8 = scmp.lt.s32.totalorder %s1358_s27, 3 }
   0xc   : > { %p242_p9 = pnand %p993_p7, %p241_p8 }
   0xd   : > { %v1278_v0 = vld [vmem:[%s1610_s1] sm:$0xff] (!%p242_p9)   ;;  %s995_s15 = sshll.u32 (!%p242_p9), %s1424_s28, 4  ;;  %v1279_v1 = vld [vmem:[%s1610_s1 + $0x8] sm:$0xff] (!%p242_p9)   ;;  %v1282_v4 = vld [vmem:[%s1612_s3 + $0x10] sm:$0xff] (!%p242_p9)   ;;  %vm328_vm0 = vcmask (!%p242_p9), 261120   ;;  %s270_s16 = sand.u32 (!%p242_p9), 1, %s1350_s25  }
   0xe   : > { %245 = sbr.rel (%p242_p9) target bundleno = 730 (0x2da), region = 48  ;;  %p274_p10 = scmp.lt.s32.totalorder (!%p242_p9), %s995_s15, 31  ;;  %1153 = vmatprep.subr.bf16.mxu0 (!%p242_p9), %v1278_v0  ;;  %v1280_v2 = vld [vmem:[%s1612_s3] sm:$0xff] (!%p242_p9)   ;;  %v1281_v3 = vld [vmem:[%s1612_s3 + $0x8] sm:$0xff] (!%p242_p9)   ;;  %v1283_v14 = vld [vmem:[%s1612_s3 + $0x18] sm:$0xff] (!%p242_p9)  }
   0xf   : > { %1154 = vmatpush3.bf16.msra.mxu0 (!%p242_p9), %v1278_v0  ;;  %1173 = vmatprep.subr.bf16.mxu1 (!%p242_p9), %v1280_v2  ;;  %v1284_v18 = vld [vmem:[%s1612_s3 + $0x20] sm:$0xff] (!%p242_p9)   ;;  %v1285_v22 = vld [vmem:[%s1612_s3 + $0x28] sm:$0xff] (!%p242_p9)   ;;  %v1286_v32 = vld [vmem:[%s1612_s3 + $0x30] sm:$0xff] (!%p242_p9)   ;;  %s994_s19 = sshll.u32 (!%p242_p9), %s270_s16, 6  ;;  %s1063_s21 = sshll.u32 (!%p242_p9), %s1424_s28, 10 }
  0x10   : > { %1155 = vmatprep.subr.bf16.mxu0 (!%p242_p9), %v1279_v1  ;;  %1174 = vmatpush3.bf16.msra.mxu1 (!%p242_p9), %v1280_v2  ;;  %v1287_v33 = vld [vmem:[%s1612_s3 + $0x38] sm:$0xff] (!%p242_p9)   ;;  %v1288_v34 = vld [vmem:[%s1614_s5] sm:$0xff] (!%p242_p9)   ;;  %v1289_v35 = vld [vmem:[%s1614_s5 + $0x8] sm:$0xff] (!%p242_p9)   ;;  %s1547_s20 = scalar_lea.vmem (!%p242_p9), [#allocation2], %s994_s19  ;;  %s1560_s9 = scalar_lea.hbm (!%p242_p9), %s1616_s7, %s1063_s21 }
  0x11   : > { %1175 = vmatprep.subr.bf16.mxu1 (!%p242_p9), %v1281_v3  ;;  %v1290_v36 = vld [vmem:[%s1614_s5 + $0x10] sm:$0xff] (!%p242_p9)   ;;  %v1291_v37 = vld [vmem:[%s1614_s5 + $0x18] sm:$0xff] (!%p242_p9)   ;;  %v1292_v38 = vld [vmem:[%s1614_s5 + $0x20] sm:$0xff] (!%p242_p9)   ;;  %s1568_s28 = scalar_lea.sflag (!%p242_p9), [#allocation3], %s270_s16  ;;  %s1360_s13 = smov (!%p242_p9), [#allocation2]  }
  0x12   : > { %v1293_v39 = vld [vmem:[%s1614_s5 + $0x28] sm:$0xff] (!%p242_p9)   ;;  %v997_v40 = vld [vmem:[%s1611_s2] ss:$0 sm:$0xff] (!%p242_p9)  ;;  %s1300_s14 = sshll.u32 (!%p242_p9), %s1360_s13, 4  ;;  %s1301_s14 = int_to_ptr.vmem [resolvable:$false] %s1300_s14 }
  0x13   : > { %1156 = vmatpush3.bf16.msra.mxu0 (!%p242_p9), %v1279_v1 }
  0x14   : > { %1176 = vmatpush3.bf16.msra.mxu1 (!%p242_p9), %v1281_v3  ;;  %1205 = vmatprep.subr.bf16.mxu0 (!%p242_p9), %v1288_v34 }
  0x15   : > { %s1624_s15 = smov (!%p274_p10, %s995_s15), 31  ;;  %1177 = vmatprep.subr.bf16.mxu1 %v1282_v4 }
  0x16   : > { %s996_s22 = sshll.u32 %s1624_s15, 3  ;;  %s1302_s15 = scalar_lea.vmem %s1301_s14, 2048 }
  0x17   : > { %s1467_s8 = scalar_lea.vmem %s1609_s0, %s996_s22  ;;  %s928_s22 = sshll.u32 %s1547_s20, 4  ;;  %s1562_s22 = int_to_ptr.vmem [resolvable:$true] %s928_s22 }
  0x18   : > { %v281_v5 = vld [vmem:[%s1467_s8] sm:$0xff]  ;;  %v282_v6 = vld [vmem:[%s1467_s8 + $0x8] sm:$0xff]  ;;  %v283_v7 = vld [vmem:[%s1467_s8 + $0x10] sm:$0xff]  ;;  %1178 = vmatpush3.bf16.msra.mxu1 %v1282_v4  ;;  %p1303_p0 = scmp.lt.s32.totalorder %s1562_s22, %s1301_s14 }
  0x19   : > { %v297_v8 = vpack.c.bf16 %v282_v6, %v281_v5  ;;  %v284_v9 = vld [vmem:[%s1467_s8 + $0x18] sm:$0xff]  ;;  %v285_v10 = vld [vmem:[%s1467_s8 + $0x20] sm:$0xff]  ;;  %v286_v11 = vld [vmem:[%s1467_s8 + $0x28] sm:$0xff]  ;;  %1179 = vmatprep.subr.bf16.mxu1 %v1283_v14 }
  0x1a   : > { %v298_v12 = vpack.c.bf16 %v284_v9, %v283_v7  ;;  %v299_v13 = vpack.c.bf16 %v286_v11, %v285_v10  ;;  %v287_v15 = vld [vmem:[%s1467_s8 + $0x30] sm:$0xff]  ;;  %v288_v16 = vld [vmem:[%s1467_s8 + $0x38] sm:$0xff]  ;;  %v289_v17 = vld [vmem:[%s1467_s8 + $0x40] sm:$0xff] }
  0x1b   : > { %1157 = vmatprep.mubr.msk.bf16.mxu0 %vm328_vm0, %v297_v8  ;;  %v290_v19 = vld [vmem:[%s1467_s8 + $0x48] sm:$0xff]  ;;  %v300_v20 = vpack.c.bf16 %v288_v16, %v287_v15  ;;  %v291_v23 = vld [vmem:[%s1467_s8 + $0x50] sm:$0xff]  ;;  %v292_v24 = vld [vmem:[%s1467_s8 + $0x58] sm:$0xff] }
  0x1c   : > { %1158 = vmatmul.mubr.msk.bf16.vlgmr.msra.gmra.mrb[0].mxu0 %vm328_vm0, %v298_v12  ;;  %v301_v21 = vpack.c.bf16 %v290_v19, %v289_v17  ;;  %1180 = vmatpush3.bf16.msra.mxu1 %v1283_v14  ;;  %v293_v25 = vld [vmem:[%s1467_s8 + $0x60] sm:$0xff]  ;;  %v294_v26 = vld [vmem:[%s1467_s8 + $0x68] sm:$0xff]  ;;  %v302_v27 = vpack.c.bf16 %v292_v24, %v291_v23  ;;  %v295_v29 = vld [vmem:[%s1467_s8 + $0x70] sm:$0xff] }
  0x1d   : > { %1161 = vmatprep.mubr.msk.bf16.mxu0 %vm328_vm0, %v299_v13  ;;  %1181 = vmatprep.subr.bf16.mxu1 %v1284_v18  ;;  %v303_v28 = vpack.c.bf16 %v294_v26, %v293_v25  ;;  %v296_v30 = vld [vmem:[%s1467_s8 + $0x78] sm:$0xff]  ;;  %s1296_s8 = scalar_lea.vmem %s1562_s22, 1024 }
  0x1e   : > { %v304_v31 = vpack.c.bf16 %v296_v30, %v295_v29  ;;  %1206 = vmatpush3.bf16.msra.mxu0 %v1288_v34  ;;  %v1295_v34 = vld [vmem:[%s1614_s5 + $0x38] sm:$0xff]   ;;  %p1297_p11 = scmp.ne.s32.totalorder %s1562_s22, %s1296_s8  ;;  %p1304_p1 = scmp.lt.s32.totalorder %s1302_s15, %s1296_s8 }
  0x1f   : > { %1207 = vmatprep.subr.bf16.mxu0 %v1289_v35 }
  0x20   : > { %1182 = vmatpush3.bf16.msra.mxu1 %v1284_v18  ;;  %p1298_p12 = pnand %p1297_p11, %p1441_p5  ;;  %p1305_p2 = por %p1304_p1, %p1303_p0 }
  0x21   : > { %1183 = vmatprep.subr.bf16.mxu1 %v1285_v22 }
  0x22   : > { %1208 = vmatpush3.bf16.msra.mxu0 %v1289_v35  ;;  %v1008_v35 = vld [vmem:[%s1613_s4] ss:$0 sm:$0xff]  ;;  %p1299_p13 = pneg %p1298_p12 }
  0x23   : > { %1209 = vmatprep.subr.bf16.mxu0 %v1290_v36 }
  0x24   : > { %1162 = vmatmul.mubr.msk.bf16.gmra.mrb[4].mxu0 %vm328_vm0, %v300_v20  ;;  %1184 = vmatpush3.bf16.msra.mxu1 %v1285_v22  ;;  %p1306_p3 = pnand %p1305_p2, %p1299_p13 }
  0x25   : > { %1165 = vmatprep.mubr.msk.bf16.mxu0 %vm328_vm0, %v301_v21  ;;  %1185 = vmatprep.subr.bf16.mxu1 %v1286_v32 }
  0x26   : > { %1210 = vmatpush3.bf16.msra.mxu0 %v1290_v36 }
  0x27   : > { %1211 = vmatprep.subr.bf16.mxu0 %v1291_v37 }
  0x28   : > { %1186 = vmatpush3.bf16.msra.mxu1 %v1286_v32 }
  0x29   : > { %1187 = vmatprep.subr.bf16.mxu1 %v1287_v33 }
  0x2a   : > { %1212 = vmatpush3.bf16.msra.mxu0 %v1291_v37 }
  0x2b   : > { %1213 = vmatprep.subr.bf16.mxu0 %v1292_v38 }
  0x2c   : > { %1166 = vmatmul.mubr.msk.bf16.gmra.mrb[8].mxu0 %vm328_vm0, %v302_v27  ;;  %1188 = vmatpush3.bf16.msra.mxu1 %v1287_v33  ;;  %v1294_v33 = vld [vmem:[%s1614_s5 + $0x30] sm:$0xff]  }
  0x2d   : > { %1169 = vmatprep.mubr.msk.bf16.mxu0 %vm328_vm0, %v303_v28 }
  0x2e   : > { %1214 = vmatpush3.bf16.msra.mxu0 %v1292_v38 }
  0x2f   : > { %1215 = vmatprep.subr.bf16.mxu0 %v1293_v39 }
  0x32   : > { %1216 = vmatpush3.bf16.msra.mxu0 %v1293_v39 }
  0x33   : > { %1217 = vmatprep.subr.bf16.mxu0 %v1294_v33 }
  0x34   : > { %1170 = vmatmul.mubr.msk.bf16.gmra.mrb[12].mxu0 %vm328_vm0, %v304_v31 }
  0x36   : > { %1218 = vmatpush3.bf16.msra.mxu0 %v1294_v33 }
  0x37   : > { %1219 = vmatprep.subr.bf16.mxu0 %v1295_v34 }
  0x3a   : > { %1220 = vmatpush3.bf16.msra.mxu0 %v1295_v34 }
  0xef   : > { %v1159_v41 = vpop.f32.mrb[0].mxu0 }
  0xf0   : > { %v396_v42 = vadd.f32 %v1159_v41, %v997_v40  ;;  %v387_v43 = vpop.f32.mrb[1].mxu0 }
  0xf1   : > { %v388_v44 = vadd.f32 %v997_v40, %v387_v43  ;;  %v1160_v45 = vpop.f32.mrb[2].mxu0 }
  0xf2   : > { %v399_v46 = vadd.f32 %v1160_v45, %v997_v40  ;;  %v390_v47 = vpop.f32.mrb[3].mxu0  ;;  %v452_v49 = vmax.f32 %v396_v42, 0.0 }
  0xf3   : > { %v391_v48 = vadd.f32 %v997_v40, %v390_v47  ;;  %v450_v51 = vmax.f32 %v388_v44, 0.0 }
  0xf4   : > { %v453_v50 = vmax.f32 %v399_v46, 0.0 }
  0xf5   : > { %v451_v52 = vmax.f32 %v391_v48, 0.0 }
  0xf6   : > { %v467_v53 = vpack.c.bf16 %v453_v50, %v452_v49 }
  0xf7   : > { %v1163_v54 = vpop.f32.mrb[4].mxu0  ;;  %v466_v55 = vpack.c.bf16 %v451_v52, %v450_v51 }
  0xf8   : > { %v412_v56 = vadd.f32 %v1163_v54, %v997_v40  ;;  %v403_v57 = vpop.f32.mrb[5].mxu0 }
  0xf9   : > { %v404_v58 = vadd.f32 %v997_v40, %v403_v57  ;;  %v1164_v59 = vpop.f32.mrb[6].mxu0  ;;  %1189 = vmatprep.mubr.bf16.mxu1 %v466_v55 }
  0xfa   : > { %v415_v60 = vadd.f32 %v1164_v59, %v997_v40  ;;  %v406_v61 = vpop.f32.mrb[7].mxu0  ;;  %1190 = vmatmul.mubr.bf16.vlgmr.msra.gmra.mrb[0].mxu1 %v467_v53  ;;  %v456_v63 = vmax.f32 %v412_v56, 0.0 }
  0xfb   : > { %v407_v62 = vadd.f32 %v997_v40, %v406_v61  ;;  %v454_v1 = vmax.f32 %v404_v58, 0.0 }
  0xfc   : > { %v457_v0 = vmax.f32 %v415_v60, 0.0 }
  0xfd   : > { %v455_v2 = vmax.f32 %v407_v62, 0.0 }
  0xfe   : > { %v469_v3 = vpack.c.bf16 %v457_v0, %v456_v63 }
  0xff   : > { %v468_v4 = vpack.c.bf16 %v455_v2, %v454_v1  ;;  %v1167_v5 = vpop.f32.mrb[8].mxu0 }
 0x100   : > { %v428_v6 = vadd.f32 %v1167_v5, %v997_v40  ;;  %v419_v7 = vpop.f32.mrb[9].mxu0 }
 0x101   : > { %v420_v8 = vadd.f32 %v997_v40, %v419_v7  ;;  %v1168_v9 = vpop.f32.mrb[10].mxu0  ;;  %1193 = vmatprep.mubr.bf16.mxu1 %v468_v4 }
 0x102   : > { %v431_v10 = vadd.f32 %v1168_v9, %v997_v40  ;;  %v422_v11 = vpop.f32.mrb[11].mxu0  ;;  %1194 = vmatmul.mubr.bf16.gmra.mrb[4].mxu1 %v469_v3  ;;  %v460_v13 = vmax.f32 %v428_v6, 0.0 }
 0x103   : > { %v423_v12 = vadd.f32 %v997_v40, %v422_v11  ;;  %v458_v15 = vmax.f32 %v420_v8, 0.0 }
 0x104   : > { %v461_v14 = vmax.f32 %v431_v10, 0.0 }
 0x105   : > { %v459_v16 = vmax.f32 %v423_v12, 0.0 }
 0x106   : > { %v471_v17 = vpack.c.bf16 %v461_v14, %v460_v13 }
 0x107   : > { %v470_v18 = vpack.c.bf16 %v459_v16, %v458_v15  ;;  %v1171_v19 = vpop.f32.mrb[12].mxu0 }
 0x108   : > { %v444_v20 = vadd.f32 %v1171_v19, %v997_v40  ;;  %v435_v21 = vpop.f32.mrb[13].mxu0 }
 0x109   : > { %v436_v22 = vadd.f32 %v997_v40, %v435_v21  ;;  %v1172_v23 = vpop.f32.mrb[14].mxu0  ;;  %1197 = vmatprep.mubr.bf16.mxu1 %v470_v18 }
 0x10a   : > { %v447_v24 = vadd.f32 %v1172_v23, %v997_v40  ;;  %v438_v25 = vpop.f32.mrb[15].mxu0  ;;  %1198 = vmatmul.mubr.bf16.gmra.mrb[8].mxu1 %v471_v17  ;;  %v464_v27 = vmax.f32 %v444_v20, 0.0 }
 0x10b   : > { %v439_v26 = vadd.f32 %v997_v40, %v438_v25  ;;  %v462_v29 = vmax.f32 %v436_v22, 0.0 }
 0x10c   : > { %v465_v28 = vmax.f32 %v447_v24, 0.0 }
 0x10d   : > { %v463_v30 = vmax.f32 %v439_v26, 0.0 }
 0x10e   : > { %v473_v31 = vpack.c.bf16 %v465_v28, %v464_v27 }
 0x10f   : > { %v472_v32 = vpack.c.bf16 %v463_v30, %v462_v29  ;;  %v1017_v29 = vld [vmem:[%s1615_s6] ss:$0 sm:$0xff] }
 0x111   : > { %1201 = vmatprep.mubr.bf16.mxu1 %v472_v32 }
 0x112   : > { %1202 = vmatmul.mubr.bf16.gmra.mrb[12].mxu1 %v473_v31 }
 0x1cd   : > { %v1191_v36 = vpop.f32.mrb[0].mxu1 }
 0x1ce   : > { %v588_v37 = vadd.f32 %v1191_v36, %v1008_v35  ;;  %v579_v38 = vpop.f32.mrb[1].mxu1 }
 0x1cf   : > { %v580_v39 = vadd.f32 %v1008_v35, %v579_v38  ;;  %v1192_v40 = vpop.f32.mrb[2].mxu1 }
 0x1d0   : > { %v591_v41 = vadd.f32 %v1192_v40, %v1008_v35  ;;  %v582_v42 = vpop.f32.mrb[3].mxu1  ;;  %v644_v44 = vmax.f32 %v588_v37, 0.0 }
 0x1d1   : > { %v583_v43 = vadd.f32 %v1008_v35, %v582_v42  ;;  %v642_v46 = vmax.f32 %v580_v39, 0.0 }
 0x1d2   : > { %v645_v45 = vmax.f32 %v591_v41, 0.0 }
 0x1d3   : > { %v643_v47 = vmax.f32 %v583_v43, 0.0 }
 0x1d4   : > { %v659_v48 = vpack.c.bf16 %v645_v45, %v644_v44 }
 0x1d5   : > { %v658_v49 = vpack.c.bf16 %v643_v47, %v642_v46  ;;  %v1195_v50 = vpop.f32.mrb[4].mxu1 }
 0x1d6   : > { %v604_v51 = vadd.f32 %v1195_v50, %v1008_v35  ;;  %v595_v52 = vpop.f32.mrb[5].mxu1 }
 0x1d7   : > { %v596_v53 = vadd.f32 %v1008_v35, %v595_v52  ;;  %v1196_v54 = vpop.f32.mrb[6].mxu1  ;;  %1221 = vmatprep.mubr.bf16.mxu0 %v658_v49 }
 0x1d8   : > { %v607_v55 = vadd.f32 %v1196_v54, %v1008_v35  ;;  %v598_v56 = vpop.f32.mrb[7].mxu1  ;;  %1222 = vmatmul.mubr.bf16.vlgmr.msra.gmra.mrb[16].mxu0 %v659_v48  ;;  %v648_v58 = vmax.f32 %v604_v51, 0.0 }
 0x1d9   : > { %v599_v57 = vadd.f32 %v1008_v35, %v598_v56  ;;  %v646_v60 = vmax.f32 %v596_v53, 0.0 }
 0x1da   : > { %v649_v59 = vmax.f32 %v607_v55, 0.0 }
 0x1db   : > { %v647_v61 = vmax.f32 %v599_v57, 0.0 }
 0x1dc   : > { %v661_v62 = vpack.c.bf16 %v649_v59, %v648_v58 }
 0x1dd   : > { %v660_v63 = vpack.c.bf16 %v647_v61, %v646_v60  ;;  %v1199_v0 = vpop.f32.mrb[8].mxu1 }
 0x1de   : > { %v620_v1 = vadd.f32 %v1199_v0, %v1008_v35  ;;  %v611_v2 = vpop.f32.mrb[9].mxu1 }
 0x1df   : > { %v612_v3 = vadd.f32 %v1008_v35, %v611_v2  ;;  %v1200_v4 = vpop.f32.mrb[10].mxu1  ;;  %1225 = vmatprep.mubr.bf16.mxu0 %v660_v63 }
 0x1e0   : > { %v623_v5 = vadd.f32 %v1200_v4, %v1008_v35  ;;  %v614_v6 = vpop.f32.mrb[11].mxu1  ;;  %1226 = vmatmul.mubr.bf16.gmra.mrb[20].mxu0 %v661_v62  ;;  %v652_v8 = vmax.f32 %v620_v1, 0.0 }
 0x1e1   : > { %v615_v7 = vadd.f32 %v1008_v35, %v614_v6  ;;  %v650_v10 = vmax.f32 %v612_v3, 0.0 }
 0x1e2   : > { %v653_v9 = vmax.f32 %v623_v5, 0.0 }
 0x1e3   : > { %v651_v11 = vmax.f32 %v615_v7, 0.0 }
 0x1e4   : > { %v663_v12 = vpack.c.bf16 %v653_v9, %v652_v8 }
 0x1e5   : > { %v662_v13 = vpack.c.bf16 %v651_v11, %v650_v10  ;;  %v1203_v14 = vpop.f32.mrb[12].mxu1 }
 0x1e6   : > { %v636_v15 = vadd.f32 %v1203_v14, %v1008_v35  ;;  %v627_v16 = vpop.f32.mrb[13].mxu1 }
 0x1e7   : > { %v628_v17 = vadd.f32 %v1008_v35, %v627_v16  ;;  %v1204_v18 = vpop.f32.mrb[14].mxu1  ;;  %1229 = vmatprep.mubr.bf16.mxu0 %v662_v13 }
 0x1e8   : > { %v639_v19 = vadd.f32 %v1204_v18, %v1008_v35  ;;  %v630_v20 = vpop.f32.mrb[15].mxu1  ;;  %1230 = vmatmul.mubr.bf16.gmra.mrb[24].mxu0 %v663_v12  ;;  %v656_v22 = vmax.f32 %v636_v15, 0.0 }
 0x1e9   : > { %v631_v21 = vadd.f32 %v1008_v35, %v630_v20  ;;  %v654_v24 = vmax.f32 %v628_v17, 0.0 }
 0x1ea   : > { %v657_v23 = vmax.f32 %v639_v19, 0.0 }
 0x1eb   : > { %v655_v25 = vmax.f32 %v631_v21, 0.0 }
 0x1ec   : > { %v665_v26 = vpack.c.bf16 %v657_v23, %v656_v22 }
 0x1ed   : > { %v664_v27 = vpack.c.bf16 %v655_v25, %v654_v24 }
 0x1ef   : > { %1233 = vmatprep.mubr.bf16.mxu0 %v664_v27 }
 0x1f0   : > { %1234 = vmatmul.mubr.bf16.gmra.mrb[28].mxu0 %v665_v26 }
 0x2ab   : > { %v1223_v28 = vpop.f32.mrb[16].mxu0 }
 0x2ac   : > { %v771_v30 = vpop.f32.mrb[17].mxu0  ;;  %v780_v32 = vadd.f32 %v1223_v28, %v1017_v29 }
 0x2ad   : > { %v1224_v31 = vpop.f32.mrb[18].mxu0  ;;  %v772_v35 = vadd.f32 %v1017_v29, %v771_v30 }
 0x2ae   : > { %v783_v33 = vadd.f32 %v1224_v31, %v1017_v29  ;;  %v774_v34 = vpop.f32.mrb[19].mxu0 }
 0x2af   : > { %v775_v36 = vadd.f32 %v1017_v29, %v774_v34 }
 0x2b0   : > { %v1072_v37 = vpack.c.bf16 %v783_v33, %v780_v32 }
 0x2b1   : > { %v1067_v38 = vpack.c.bf16 %v775_v36, %v772_v35 }
 0x2b2   : > { %1104 = vst [vmem:[%s1547_s20 + $0x8] sm:$0xff] %v1072_v37  }
 0x2b3   : > { %1068 = vst [vmem:[%s1547_s20] sm:$0xff] %v1067_v38   ;;  %v1227_v39 = vpop.f32.mrb[20].mxu0 }
 0x2b4   : > { %v787_v40 = vpop.f32.mrb[21].mxu0  ;;  %v796_v42 = vadd.f32 %v1227_v39, %v1017_v29 }
 0x2b5   : > { %v1228_v41 = vpop.f32.mrb[22].mxu0  ;;  %v788_v45 = vadd.f32 %v1017_v29, %v787_v40 }
 0x2b6   : > { %v799_v43 = vadd.f32 %v1228_v41, %v1017_v29  ;;  %v790_v44 = vpop.f32.mrb[23].mxu0 }
 0x2b7   : > { %v791_v46 = vadd.f32 %v1017_v29, %v790_v44 }
 0x2b8   : > { %v1082_v47 = vpack.c.bf16 %v799_v43, %v796_v42 }
 0x2b9   : > { %v1077_v48 = vpack.c.bf16 %v791_v46, %v788_v45 }
 0x2ba   : > { %1106 = vst [vmem:[%s1547_s20 + $0x18] sm:$0xff] %v1082_v47  }
 0x2bb   : > { %1105 = vst [vmem:[%s1547_s20 + $0x10] sm:$0xff] %v1077_v48   ;;  %v1231_v49 = vpop.f32.mrb[24].mxu0 }
 0x2bc   : > { %v803_v50 = vpop.f32.mrb[25].mxu0  ;;  %v812_v52 = vadd.f32 %v1231_v49, %v1017_v29 }
 0x2bd   : > { %v1232_v51 = vpop.f32.mrb[26].mxu0  ;;  %v804_v55 = vadd.f32 %v1017_v29, %v803_v50 }
 0x2be   : > { %v815_v53 = vadd.f32 %v1232_v51, %v1017_v29  ;;  %v806_v54 = vpop.f32.mrb[27].mxu0 }
 0x2bf   : > { %v807_v56 = vadd.f32 %v1017_v29, %v806_v54 }
 0x2c0   : > { %v1092_v57 = vpack.c.bf16 %v815_v53, %v812_v52 }
 0x2c1   : > { %v1087_v58 = vpack.c.bf16 %v807_v56, %v804_v55 }
 0x2c2   : > { %1108 = vst [vmem:[%s1547_s20 + $0x28] sm:$0xff] %v1092_v57  }
 0x2c3   : > { %1107 = vst [vmem:[%s1547_s20 + $0x20] sm:$0xff] %v1087_v58   ;;  %v1235_v59 = vpop.f32.mrb[28].mxu0 }
 0x2c4   : > { %v819_v60 = vpop.f32.mrb[29].mxu0  ;;  %v828_v62 = vadd.f32 %v1235_v59, %v1017_v29 }
 0x2c5   : > { %v1236_v61 = vpop.f32.mrb[30].mxu0  ;;  %v820_v1 = vadd.f32 %v1017_v29, %v819_v60 }
 0x2c6   : > { %v831_v63 = vadd.f32 %v1236_v61, %v1017_v29  ;;  %v822_v0 = vpop.f32.mrb[31].mxu0 }
 0x2c7   : > { %v823_v2 = vadd.f32 %v1017_v29, %v822_v0 }
 0x2c8   : > { %v1102_v3 = vpack.c.bf16 %v831_v63, %v828_v62 }
 0x2c9   : > { %v1097_v4 = vpack.c.bf16 %v823_v2, %v820_v1 }
 0x2ca   : > { %1110 = vst [vmem:[%s1547_s20 + $0x38] sm:$0xff] %v1102_v3  }
 0x2cb   : > { %1109 = vst [vmem:[%s1547_s20 + $0x30] sm:$0xff] %v1097_v4  }
 0x2cc   : > { %1309 = shalt.err (!%p1306_p3)
}
 0x2cd   : > { %s1310_s16 = scalar_lea.hbm %s1560_s9, 1024  ;;  %s1314_s19 = scalar_lea.hbm %s1616_s7, 2048 }
 0x2ce   : > { %p1311_p4 = scmp.ne.s32.totalorder %s1560_s9, %s1310_s16  ;;  %p1315_p9 = scmp.lt.u32.totalorder %s1560_s9, %s1616_s7 }
 0x2cf   : > { %p1316_p10 = scmp.lt.u32.totalorder %s1314_s19, %s1310_s16  ;;  %p1318_p12 = scmp.lt.u32.totalorder %s1310_s16, %s1560_s9 }
 0x2d0   : > { %p1312_p7 = pnand %p1311_p4, %p1441_p5 }
 0x2d1   : > { %p1317_p11 = por %p1316_p10, %p1315_p9 }
 0x2d2   : > { %p1313_p8 = pneg %p1312_p7 }
 0x2d3   : > { %p1319_p13 = por %p1318_p12, %p1317_p11 }
 0x2d5   : > { %p1320_p0 = pnand %p1319_p13, %p1313_p8 }
 0x2d7   : > { %1323 = shalt.err (!%p1320_p0)
}
 0x2d8   : > { %s1361_s23 = smov 64   ;;  %s1362_s29 = smov 4  }
 0x2d9   : > { %1237 = dma.vmem_to_hbm [thread:$0]  (%p1441_p5), %s1562_s22, 1024, %s1560_s9, %s1568_s28, %s1361_s23, %s1361_s23, %s1362_s29  }
 0x2da PF: > { %p1243_p1 = scmp.ge.s32.totalorder %s1358_s27, 2  ;;  %s943_s8 = sand.u32 1, %s1346_s24  }
 0x2db   : > { %s944_s13 = scalar_lea.sflag [#allocation3], %s943_s8 }
 0x2dc   : > { %p1240_p2 = pnand %p1243_p1, %p1445_p6 }
 0x2de   : > { %1341 = dma.done.wait (!%p1240_p2), %s944_s13, 1024  }
 0x2df   : > { %1343 = vsyncadd (!%p1240_p2), %s944_s13, 4294966272  ;;  %p17_p3 = scmp.ge.s32.totalorder %s1428_s30, 4   ;;  %s1619_s24 = smov %s1350_s25 }
 0x2e0   : > { %s1620_s25 = smov %s1354_s26  ;;  %s1621_s26 = smov %s1439_s10 }
 0x2e1   : > { %s1622_s27 = smov %s1428_s30  ;;  %19 = sbr.rel (!%p17_p3) target bundleno = 3 (0x3), region = 83 }
 0x2e8   :  { %949 = vsyncpa [#allocation3], 1 }
 0x2e9   :  { %951 = vsyncpa [#allocation3 + $0x1], 1 }

</bundles_post_ra>
